<compile_context>
chip_gen: v5e
topology: v5e:2x2
jax: 0.10.0
libtpu: 0.0.40
codegen_flags: <defaults>
</compile_context>

<pallas_src>
import functools

import jax
import jax.numpy as jnp
from jax import lax
from jax.experimental import pallas as pl
from jax.experimental.pallas import tpu as pltpu


# -----------------------------------------------------------------------------
# Tiling / VMEM planning
# -----------------------------------------------------------------------------

def _vmem_config():
    """(per-step tile budget bytes, vmem_limit_bytes) from the chip's VMEM."""
    vmem = None
    try:
        vmem = int(pltpu.get_tpu_info().vmem_capacity_bytes)
    except Exception:
        vmem = None
    if not vmem:
        try:
            kind = jax.devices()[0].device_kind.lower()
        except Exception:
            kind = ""
        if ("v4" in kind) or ("v5" in kind) or ("v6" in kind):
            vmem = 128 << 20          # 128 MiB physical VMEM
        else:
            vmem = 64 << 20           # v7x: 64 MiB per TensorCore; unknown: same
    tile_budget = min(vmem * 3 // 8, 32 << 20)   # v7x: 24 MiB, v5e/v6e: 32 MiB
    vmem_limit = min(vmem * 3 // 4, 64 << 20)    # v7x: 48 MiB, v5e/v6e: 64 MiB
    return tile_budget, vmem_limit


def _plan(rows, hw_c, hw_s, itemsize_c, itemsize_s, tile_budget):
    """Pick execution mode and row-block size.

    Fused-kernel per-row footprint:
      * double-buffered pipeline buffers in the native dtype:
          content in (2*hw_c), output (2*hw_c), style in (2*hw_s)
      * ~3 full-row f32 in-kernel temporaries for content (upcast, square,
        fused result) and ~2 for style.
    """
    bytes_per_row = (itemsize_c * 4 * hw_c + itemsize_s * 2 * hw_s
                     + 4 * (3 * hw_c + 2 * hw_s))
    min_blk = rows if rows < 8 else 8
    if min_blk * bytes_per_row > tile_budget:
        return "chunked", min_blk       # even 8 rows don't fit -> chunk lanes
    blk = tile_budget // bytes_per_row
    blk = min(blk, 2048, rows)
    if rows >= 32:
        # >= 4 grid steps: two per v7x TensorCore, so per-core double-buffering
        # still overlaps DMA with compute.
        blk = min(blk, rows // 4)
    if blk < rows:
        blk = max(8, (blk // 8) * 8)    # sublane-aligned partial tiling
    return "fused", blk


def _pick_chunk(hw, blk_r, itemsize, tile_budget, max_chunk=None):
    """Lane-chunk size for the fallback path (multiple of 128 or full extent)."""
    # per-(row, lane) bytes: double-buffered in + out in native dtype plus
    # ~3 f32-sized in-kernel temporaries.
    per_elem = 4 * itemsize + 12
    chunk = tile_budget // max(blk_r * per_elem, 1)
    if max_chunk is not None:
        chunk = min(chunk, max_chunk)
    if chunk >= hw:
        return hw                        # single full-extent chunk (always legal)
    return max(128, (chunk // 128) * 128)


# -----------------------------------------------------------------------------
# Kernels
# -----------------------------------------------------------------------------

def _adain_fused_kernel(c_ref, s_ref, o_ref, *, n_c, n_s):
    """Single-pass AdaIN: stats + fused scale/bias apply over whole rows."""
    c = c_ref[...].astype(jnp.float32)
    s = s_ref[...].astype(jnp.float32)

    # Ragged lane tails (H*W % 128 != 0): zero the pad lanes before reducing.
    # One VALU select pass; the kernel is HBM-bound so this is free.
    if n_c % 128:
        lane_c = lax.broadcasted_iota(jnp.int32, c.shape, 1)
        c = jnp.where(lane_c < n_c, c, 0.0)
    if n_s % 128:
        lane_s = lax.broadcasted_iota(jnp.int32, s.shape, 1)
        s = jnp.where(lane_s < n_s, s, 0.0)

    # One-pass statistics: var = (sum_sq - n*mean^2)/(n-1) (unbiased, no eps).
    c_sum = jnp.sum(c, axis=-1, keepdims=True)
    c_ssq = jnp.sum(c * c, axis=-1, keepdims=True)
    s_sum = jnp.sum(s, axis=-1, keepdims=True)
    s_ssq = jnp.sum(s * s, axis=-1, keepdims=True)

    c_mean = c_sum * (1.0 / n_c)
    s_mean = s_sum * (1.0 / n_s)
    c_var = (c_ssq - n_c * (c_mean * c_mean)) * (1.0 / (n_c - 1))
    s_var = (s_ssq - n_s * (s_mean * s_mean)) * (1.0 / (n_s - 1))

    # Fused apply: o = c*scale + bias. Divide/sqrt folded into one per-row
    # rsqrt (EUP slot). (blk, 1) operands broadcast implicitly — no
    # materialized full-tile broadcasts.
    scale = jnp.sqrt(s_var) * lax.rsqrt(c_var)
    bias = s_mean - c_mean * scale
    o_ref[...] = (c * scale + bias).astype(o_ref.dtype)


def _row_stats_kernel(x_ref, sum_ref, ssq_ref, *, chunk, n):
    """Accumulate per-row sum / sum-of-squares over lane chunks (axis 1 = reduction)."""
    k = pl.program_id(1)

    @pl.when(k == 0)
    def _():
        sum_ref[...] = jnp.zeros_like(sum_ref)
        ssq_ref[...] = jnp.zeros_like(ssq_ref)

    x = x_ref[...].astype(jnp.float32)
    if (n % chunk) or (chunk % 128):
        lane = k * chunk + lax.broadcasted_iota(jnp.int32, x.shape, 1)
        x = jnp.where(lane < n, x, 0.0)
    sum_ref[...] += jnp.sum(x, axis=-1, keepdims=True)
    ssq_ref[...] += jnp.sum(x * x, axis=-1, keepdims=True)


def _apply_kernel(scale_ref, bias_ref, c_ref, o_ref):
    """o = c * scale + bias with per-row (blk, 1) scale/bias."""
    o_ref[...] = (c_ref[...].astype(jnp.float32) * scale_ref[...]
                  + bias_ref[...]).astype(o_ref.dtype)


# -----------------------------------------------------------------------------
# pallas_call wrappers
# -----------------------------------------------------------------------------

def _adain_fused(c2, s2, blk, vmem_limit):
    rows, hw_c = c2.shape
    _, hw_s = s2.shape
    kernel = functools.partial(_adain_fused_kernel, n_c=hw_c, n_s=hw_s)
    return pl.pallas_call(
        kernel,
        out_shape=jax.ShapeDtypeStruct((rows, hw_c), c2.dtype),
        grid_spec=pltpu.PrefetchScalarGridSpec(
            num_scalar_prefetch=0,
            grid=(pl.cdiv(rows, blk),),
            in_specs=[
                pl.BlockSpec((blk, hw_c), lambda i: (i, 0)),
                pl.BlockSpec((blk, hw_s), lambda i: (i, 0)),
            ],
            out_specs=pl.BlockSpec((blk, hw_c), lambda i: (i, 0)),
        ),
        compiler_params=pltpu.CompilerParams(
            dimension_semantics=("parallel",),
            vmem_limit_bytes=vmem_limit,
        ),
    )(c2, s2)


def _row_stats(x2, blk_r, chunk, vmem_limit):
    rows, n = x2.shape
    kernel = functools.partial(_row_stats_kernel, chunk=chunk, n=n)
    return pl.pallas_call(
        kernel,
        out_shape=(jax.ShapeDtypeStruct((rows, 1), jnp.float32),
                   jax.ShapeDtypeStruct((rows, 1), jnp.float32)),
        grid_spec=pltpu.PrefetchScalarGridSpec(
            num_scalar_prefetch=0,
            grid=(pl.cdiv(rows, blk_r), pl.cdiv(n, chunk)),
            in_specs=[pl.BlockSpec((blk_r, chunk), lambda i, k: (i, k))],
            out_specs=(pl.BlockSpec((blk_r, 1), lambda i, k: (i, 0)),
                       pl.BlockSpec((blk_r, 1), lambda i, k: (i, 0))),
        ),
        compiler_params=pltpu.CompilerParams(
            dimension_semantics=("parallel", "arbitrary"),
            vmem_limit_bytes=vmem_limit,
        ),
    )(x2)


def _apply_scale_bias(c2, scale, bias, blk_r, chunk, vmem_limit):
    rows, n = c2.shape
    return pl.pallas_call(
        _apply_kernel,
        out_shape=jax.ShapeDtypeStruct((rows, n), c2.dtype),
        grid_spec=pltpu.PrefetchScalarGridSpec(
            num_scalar_prefetch=0,
            grid=(pl.cdiv(rows, blk_r), pl.cdiv(n, chunk)),
            in_specs=[
                pl.BlockSpec((blk_r, 1), lambda i, k: (i, 0)),
                pl.BlockSpec((blk_r, 1), lambda i, k: (i, 0)),
                pl.BlockSpec((blk_r, chunk), lambda i, k: (i, k)),
            ],
            out_specs=pl.BlockSpec((blk_r, chunk), lambda i, k: (i, k)),
        ),
        compiler_params=pltpu.CompilerParams(
            dimension_semantics=("parallel", "parallel"),
            vmem_limit_bytes=vmem_limit,
        ),
    )(scale, bias, c2)


def _adain_chunked(c2, s2, blk_r, tile_budget, vmem_limit, max_chunk=None):
    """Fallback for very large H*W: lane-chunked stats + lane-chunked apply.

    Reads content twice (stats pass + apply pass) but keeps every tile bounded
    in VMEM on all TPU generations.
    """
    rows, hw_c = c2.shape
    _, hw_s = s2.shape
    chunk_c = _pick_chunk(hw_c, blk_r, jnp.dtype(c2.dtype).itemsize,
                          tile_budget, max_chunk)
    chunk_s = _pick_chunk(hw_s, blk_r, jnp.dtype(s2.dtype).itemsize,
                          tile_budget, max_chunk)

    c_sum, c_ssq = _row_stats(c2, blk_r, chunk_c, vmem_limit)
    s_sum, s_ssq = _row_stats(s2, blk_r, chunk_s, vmem_limit)

    # Tiny (rows, 1) math: fold the stats into per-row scale/bias in plain JAX.
    c_mean = c_sum * (1.0 / hw_c)
    s_mean = s_sum * (1.0 / hw_s)
    c_var = (c_ssq - hw_c * (c_mean * c_mean)) * (1.0 / (hw_c - 1))
    s_var = (s_ssq - hw_s * (s_mean * s_mean)) * (1.0 / (hw_s - 1))
    scale = jnp.sqrt(s_var) * lax.rsqrt(c_var)
    bias = s_mean - c_mean * scale

    return _apply_scale_bias(c2, scale, bias, blk_r, chunk_c, vmem_limit)


def adaptive_instance_norm(content_feat, style_feat, *,
                           _force_chunked=False, _max_chunk=None):
    """AdaIN forward on NCHW inputs, matching the PyTorch module exactly."""
    B, C, Hc, Wc = content_feat.shape
    Bs, Cs, Hs, Ws = style_feat.shape
    assert (B, C) == (Bs, Cs), "content and style must share batch/channel dims"
    hw_c = Hc * Wc
    hw_s = Hs * Ws
    assert hw_c > 1 and hw_s > 1, "unbiased std needs at least 2 spatial elements"

    rows = B * C
    c2 = content_feat.reshape(rows, hw_c)
    s2 = style_feat.reshape(rows, hw_s)

    itemsize_c = jnp.dtype(content_feat.dtype).itemsize
    itemsize_s = jnp.dtype(style_feat.dtype).itemsize
    tile_budget, vmem_limit = _vmem_config()
    mode, blk = _plan(rows, hw_c, hw_s, itemsize_c, itemsize_s, tile_budget)
    if _force_chunked:
        mode, blk = "chunked", (rows if rows < 8 else 8)

    if mode == "fused":
        out2 = _adain_fused(c2, s2, blk, vmem_limit)
    else:
        out2 = _adain_chunked(c2, s2, blk, tile_budget, vmem_limit,
                              max_chunk=_max_chunk)
    return out2.reshape(B, C, Hc, Wc)


def _adain_reference(content_feat, style_feat):
    """Pure-JAX reference mirroring the PyTorch module (unbiased std)."""
    c_mean = jnp.mean(content_feat, axis=(2, 3), keepdims=True)
    c_std = jnp.std(content_feat, axis=(2, 3), keepdims=True, ddof=1)
    s_mean = jnp.mean(style_feat, axis=(2, 3), keepdims=True)
    s_std = jnp.std(style_feat, axis=(2, 3), keepdims=True, ddof=1)
    return (content_feat - c_mean) / c_std * s_std + s_mean


if __name__ == "__main__":
    key = jax.random.PRNGKey(0)
    k1c, k1s, k2c, k2s, k3c, k3s = jax.random.split(key, 6)

    # 1) Lane-aligned spatial (H*W = 256): fused single-pass path.
    content = jax.random.normal(k1c, (2, 4, 16, 16), dtype=jnp.float32)
    style = 2.5 * jax.random.normal(k1s, (2, 4, 16, 16), dtype=jnp.float32) + 0.7
    out = jax.block_until_ready(adaptive_instance_norm(content, style))
    ref = _adain_reference(content, style)
    assert out.shape == ref.shape
    assert jnp.allclose(out, ref, atol=2e-4, rtol=2e-4), "mismatch (aligned)"

    # 2) Non-128-aligned spatial dims: fused path with in-kernel lane masks,
    #    no wrapper-side padding or output slicing.
    content2 = jax.random.normal(k2c, (2, 4, 12, 12), dtype=jnp.float32)
    style2 = 1.7 * jax.random.normal(k2s, (2, 4, 10, 14), dtype=jnp.float32) - 0.3
    out2 = jax.block_until_ready(adaptive_instance_norm(content2, style2))
    ref2 = _adain_reference(content2, style2)
    assert jnp.allclose(out2, ref2, atol=2e-4, rtol=2e-4), "mismatch (ragged fused)"

    # 3) Force the lane-chunked fallback (stats + apply kernels) with a small
    #    chunk so the large-H*W path, including a ragged last chunk, is tested.
    content3 = jax.random.normal(k3c, (2, 4, 12, 12), dtype=jnp.float32)
    style3 = 0.8 * jax.random.normal(k3s, (2, 4, 16, 16), dtype=jnp.float32) + 1.1
    out3 = jax.block_until_ready(
        adaptive_instance_norm(content3, style3, _force_chunked=True, _max_chunk=128))
    ref3 = _adain_reference(content3, style3)
    assert jnp.allclose(out3, ref3, atol=2e-4, rtol=2e-4), "mismatch (chunked)"

    print("KERNEL_OK")
</pallas_src>

<mosaic_0001>
module attributes {stable_mosaic.version = 11 : i64} {
  func.func @_adain_fused_kernel(%arg0: i32, %arg1: memref<8x256xf32, #tpu.memory_space<vmem>>, %arg2: memref<8x256xf32, #tpu.memory_space<vmem>>, %arg3: memref<8x256xf32, #tpu.memory_space<vmem>>) attributes {dimension_semantics = [#tpu.dimension_semantics<parallel>], iteration_bounds = array<i64: 1>, scalar_prefetch = 0 : i64, scratch_operands = 0 : i64, tpu.core_type = #tpu.core_type<tc>, window_params = [{transform_indices = @transform_0, window_bounds = array<i64: 8, 256>}, {transform_indices = @transform_1, window_bounds = array<i64: 8, 256>}, {transform_indices = @transform_2, window_bounds = array<i64: 8, 256>}]} {
    %c0 = arith.constant 0 : index
    %c0_0 = arith.constant 0 : index
    %0 = vector.load %arg1[%c0, %c0_0] : memref<8x256xf32, #tpu.memory_space<vmem>>, vector<8x256xf32>
    %c0_1 = arith.constant 0 : index
    %c0_2 = arith.constant 0 : index
    %1 = vector.load %arg2[%c0_1, %c0_2] : memref<8x256xf32, #tpu.memory_space<vmem>>, vector<8x256xf32>
    %cst = arith.constant dense<0.000000e+00> : vector<8xf32>
    %2 = vector.multi_reduction <add>, %0, %cst [1] : vector<8x256xf32> to vector<8xf32>
    %3 = vector.shape_cast %2 : vector<8xf32> to vector<8x1xf32>
    %4 = arith.mulf %0, %0 : vector<8x256xf32>
    %cst_3 = arith.constant dense<0.000000e+00> : vector<8xf32>
    %5 = vector.multi_reduction <add>, %4, %cst_3 [1] : vector<8x256xf32> to vector<8xf32>
    %6 = vector.shape_cast %5 : vector<8xf32> to vector<8x1xf32>
    %cst_4 = arith.constant dense<0.000000e+00> : vector<8xf32>
    %7 = vector.multi_reduction <add>, %1, %cst_4 [1] : vector<8x256xf32> to vector<8xf32>
    %8 = vector.shape_cast %7 : vector<8xf32> to vector<8x1xf32>
    %9 = arith.mulf %1, %1 : vector<8x256xf32>
    %cst_5 = arith.constant dense<0.000000e+00> : vector<8xf32>
    %10 = vector.multi_reduction <add>, %9, %cst_5 [1] : vector<8x256xf32> to vector<8xf32>
    %11 = vector.shape_cast %10 : vector<8xf32> to vector<8x1xf32>
    %cst_6 = arith.constant 3.906250e-03 : f32
    %12 = vector.broadcast %cst_6 : f32 to vector<8x1xf32>
    %13 = arith.mulf %3, %12 : vector<8x1xf32>
    %cst_7 = arith.constant 3.906250e-03 : f32
    %14 = vector.broadcast %cst_7 : f32 to vector<8x1xf32>
    %15 = arith.mulf %8, %14 : vector<8x1xf32>
    %16 = arith.mulf %13, %13 : vector<8x1xf32>
    %cst_8 = arith.constant 2.560000e+02 : f32
    %17 = vector.broadcast %cst_8 : f32 to vector<8x1xf32>
    %18 = arith.mulf %17, %16 : vector<8x1xf32>
    %19 = arith.subf %6, %18 : vector<8x1xf32>
    %cst_9 = arith.constant 0.00392156886 : f32
    %20 = vector.broadcast %cst_9 : f32 to vector<8x1xf32>
    %21 = arith.mulf %19, %20 : vector<8x1xf32>
    %22 = arith.mulf %15, %15 : vector<8x1xf32>
    %cst_10 = arith.constant 2.560000e+02 : f32
    %23 = vector.broadcast %cst_10 : f32 to vector<8x1xf32>
    %24 = arith.mulf %23, %22 : vector<8x1xf32>
    %25 = arith.subf %11, %24 : vector<8x1xf32>
    %cst_11 = arith.constant 0.00392156886 : f32
    %26 = vector.broadcast %cst_11 : f32 to vector<8x1xf32>
    %27 = arith.mulf %25, %26 : vector<8x1xf32>
    %28 = math.sqrt %27 : vector<8x1xf32>
    %29 = math.rsqrt %21 : vector<8x1xf32>
    %30 = arith.mulf %28, %29 : vector<8x1xf32>
    %31 = arith.mulf %13, %30 : vector<8x1xf32>
    %32 = arith.subf %15, %31 : vector<8x1xf32>
    %33 = vector.broadcast %30 : vector<8x1xf32> to vector<8x256xf32>
    %34 = arith.mulf %0, %33 : vector<8x256xf32>
    %35 = vector.broadcast %32 : vector<8x1xf32> to vector<8x256xf32>
    %36 = arith.addf %34, %35 : vector<8x256xf32>
    %c0_12 = arith.constant 0 : index
    %c0_13 = arith.constant 0 : index
    %37 = vector.load %arg3[%c0_12, %c0_13] : memref<8x256xf32, #tpu.memory_space<vmem>>, vector<8x256xf32>
    tpu.vector_store %arg3[%c0_12, %c0_13], %36 {strides = array<i32>} : memref<8x256xf32, #tpu.memory_space<vmem>>, vector<8x256xf32>,
    return
  }
  func.func @transform_0(%arg0: i32) -> (i32, i32) {
    %c0_i32 = arith.constant 0 : i32
    %c0_i32_0 = arith.constant 0 : i32
    return %arg0, %c0_i32 : i32, i32
  }
  func.func @transform_1(%arg0: i32) -> (i32, i32) {
    %c0_i32 = arith.constant 0 : i32
    %c0_i32_0 = arith.constant 0 : i32
    return %arg0, %c0_i32 : i32, i32
  }
  func.func @transform_2(%arg0: i32) -> (i32, i32) {
    %c0_i32 = arith.constant 0 : i32
    %c0_i32_0 = arith.constant 0 : i32
    return %arg0, %c0_i32 : i32, i32
  }
}

</mosaic_0001>

<bundles_post_ra>
// kernel: tpu_custom_call.1
= control target key start
LH: loop header
LB: loop body
LE: loop exit
PB: predicated region body
PF: predicated region fallthrough
CT: control target
= control target key end

     0   :  { %7 = vsyncpa [#allocation3], 0  ;;  %s231_s0 = inlined_call_operand.hbm [shape: f32[8,256], index: 0, kind: input, shape index: {}]   ;;  %s232_s1 = inlined_call_operand.hbm [shape: f32[8,256], index: 1, kind: input, shape index: {}]   ;;  %s233_s2 = inlined_call_operand.hbm [shape: f32[8,256], index: 2, kind: output, shape index: {}]  }
   0x1   :  { %8 = vsyncpa [#allocation6], 0 }
   0x2   :  { %9 = vsyncpa [#allocation4], 0  ;;  %s15_s11 = sshll.u32 %s231_s0, 4  ;;  %s204_s12 = smov [#allocation2]   ;;  %s16_s11 = int_to_ptr.hbm [resolvable:$true] %s15_s11 }
   0x3   :  { %s17_s13 = sshll.u32 %s204_s12, 4  ;;  %s26_s16 = sshll.u32 %s232_s1, 4  ;;  %s18_s13 = int_to_ptr.vmem [resolvable:$true] %s17_s13  ;;  %s27_s16 = int_to_ptr.hbm [resolvable:$true] %s26_s16 }
   0x4   :  { %20 = dma.hbm_to_vmem [thread:$0]  %s16_s11, 256, %s18_s13, [#allocation3]  }
   0x5   :  { %s205_s17 = smov [#allocation5]  }
   0x6   :  { %s28_s18 = sshll.u32 %s205_s17, 4  ;;  %s29_s18 = int_to_ptr.vmem [resolvable:$true] %s28_s18 }
   0x7   :  { %31 = dma.hbm_to_vmem [thread:$0]  %s27_s16, 256, %s29_s18, [#allocation6]  }
   0x8   :  { %198 = dma.done.wait [#allocation3], 256  }
   0x9   :  { %199 = vsyncadd [#allocation3], 4294967040 }
   0xa   :  { %200 = dma.done.wait [#allocation6], 256  }
   0xb   :  { %201 = vsyncadd [#allocation6], 4294967040  ;;  %v42_v0 = vld [vmem:[#allocation5] sm:$0xff]  ;;  %v43_v1 = vld [vmem:[#allocation5 + $0x8] sm:$0xff]  ;;  %s206_s0 = smov [#allocation7]   ;;  %s108_s21 = sshll.u32 %s233_s2, 4  ;;  %s109_s21 = int_to_ptr.hbm [resolvable:$true] %s108_s21 }
   0xc   :  { %v52_v2 = vadd.f32 %v43_v1, %v42_v0  ;;  %v55_v3 = vmul.f32 %v42_v0, %v42_v0  ;;  %v56_v4 = vmul.f32 %v43_v1, %v43_v1  ;;  %v40_v6 = vld [vmem:[#allocation2] sm:$0xff]  ;;  %v41_v7 = vld [vmem:[#allocation2 + $0x8] sm:$0xff]  ;;  %s106_s1 = sshll.u32 %s206_s0, 4  ;;  %s107_s1 = int_to_ptr.vmem [resolvable:$true] %s106_s1 }
   0xd   :  { %v47_v8 = vmul.f32 %v40_v6, %v40_v6  ;;  %v48_v9 = vmul.f32 %v41_v7, %v41_v7  ;;  %v44_v10 = vadd.f32 %v41_v7, %v40_v6 }
   0xe   :  { %53 = vadd.xlane.f32.xlu0 %v52_v2  ;;  %v57_v5 = vadd.f32 %v56_v4, %v55_v3 }
   0xf   :  { %v49_v11 = vadd.f32 %v48_v9, %v47_v8 }
  0x10   :  { %58 = vadd.xlane.f32.xlu1 %v57_v5 }
  0x16   :  { %45 = vadd.xlane.f32.xlu0 %v44_v10 }
  0x18   :  { %50 = vadd.xlane.f32.xlu1 %v49_v11 }
  0x81   :  { %v54_v12 = vpop.xlane.xlu0 %53 }
  0x82   :  { %v61_v13 = vmul.f32 0.00390625, %v54_v12 }
  0x83   :  { %v59_v14 = vpop.xlane.xlu1 %58 }
  0x84   :  { %v66_v15 = vmul.f32 %v61_v13, %v61_v13 }
  0x86   :  { %v67_v16 = vmul.f32 256.0, %v66_v15 }
  0x88   :  { %v68_v17 = vsub.f32 %v59_v14, %v67_v16 }
  0x89   :  { %v46_v18 = vpop.xlane.xlu0 %45 }
  0x8a   :  { %v69_v19 = vmul.f32 0.003921569, %v68_v17  ;;  %v60_v20 = vmul.f32 0.00390625, %v46_v18 }
  0x8b   :  { %v51_v22 = vpop.xlane.xlu1 %50 }
  0x8c   :  { %122 = vrsqrt.f32 %v69_v19  ;;  %v62_v21 = vmul.f32 %v60_v20, %v60_v20  ;;  %vm77_vm0 = vcmp.eq.f32.partialorder %v69_v19, inf  ;;  %v80_v39 = vand.u32 2147483648, %v69_v19 }
  0x8d   :  { %vm79_vm3 = vcmp.eq.f32.partialorder %v69_v19, 0.0 }
  0x8e   :  { %v63_v23 = vmul.f32 256.0, %v62_v21 }
  0x90   :  { %v64_v24 = vsub.f32 %v51_v22, %v63_v23 }
  0x92   :  { %v123_v25 = vpop.eup %122  ;;  %v65_v26 = vmul.f32 0.003921569, %v64_v24 }
  0x93   :  { %v71_v27 = vmul.f32 %v123_v25, %v69_v19 }
  0x94   :  { %124 = vrsqrt.f32 %v65_v26  ;;  %vm88_vm2 = vweird.f32 %v65_v26 }
  0x95   :  { %v72_v28 = vmul.f32 %v123_v25, %v71_v27 }
  0x97   :  { %v73_v29 = vmul.f32 0.5, %v72_v28 }
  0x99   :  { %v74_v30 = vsub.f32 1.5, %v73_v29 }
  0x9a   :  { %v125_v31 = vpop.eup %124 }
  0x9b   :  { %v75_v32 = vmul.f32 %v123_v25, %v74_v30  ;;  %v83_v33 = vmul.f32 %v125_v31, %v65_v26  ;;  %vm89_vm1 = vweird.f32 %v125_v31 }
  0x9c   :  { %vm90_vm4 = vmor %vm88_vm2, %vm89_vm1 }
  0x9d   :  { %v84_v34 = vmul.f32 %v125_v31, %v83_v33  ;;  %v76_v35 = vmul.f32 %v75_v32, %v69_v19 }
  0x9f   :  { %v85_v36 = vmul.f32 0.5, %v84_v34  ;;  %v78_v38 = vsel %vm77_vm0, %v69_v19, %v76_v35 }
  0xa0   :  { %v81_v41 = vsel %vm79_vm3, %v80_v39, %v78_v38 }
  0xa1   :  { %v86_v37 = vsub.f32 1.5, %v85_v36 }
  0xa3   :  { %v87_v40 = vmul.f32 %v125_v31, %v86_v37 }
  0xa5   :  { %v91_v42 = vsel %vm90_vm4, %v125_v31, %v87_v40 }
  0xa6   :  { %v92_v43 = vmul.f32 %v91_v42, %v81_v41 }
  0xa8   :  { %v93_v44 = vmul.f32 %v92_v43, %v60_v20  ;;  %v95_v46 = vmul.f32 %v92_v43, %v40_v6  ;;  %v96_v47 = vmul.f32 %v92_v43, %v41_v7 }
  0xaa   :  { %v94_v45 = vsub.f32 %v61_v13, %v93_v44 }
  0xac   :  { %v97_v48 = vadd.f32 %v95_v46, %v94_v45  ;;  %v98_v49 = vadd.f32 %v96_v47, %v94_v45 }
  0xae   :  { %99 = vst [vmem:[#allocation7] sm:$0xff] %v97_v48 }
  0xaf   :  { %100 = vst [vmem:[#allocation7 + $0x8] sm:$0xff] %v98_v49 }
  0xb0   :  { %111 = dma.vmem_to_hbm [thread:$0]  %s107_s1, 256, %s109_s21, [#allocation4]  }
  0xb1   :  { %202 = dma.done.wait [#allocation4], 256  }
  0xb2   :  { %203 = vsyncadd [#allocation4], 4294967040 }
  0xb3   :  { %116 = vsyncpa [#allocation3], 1 }
  0xb4   :  { %117 = vsyncpa [#allocation6], 1 }
  0xb5   :  { %118 = vsyncpa [#allocation4], 1 }

</bundles_post_ra>
